<compile_context>
chip_gen: v6e
topology: v6e:2x2x1
jax: 0.10.0
libtpu: 0.0.40
codegen_flags: <defaults>
</compile_context>

<pallas_src>
import functools
import math

import jax
import jax.numpy as jnp
from jax.experimental import pallas as pl
from jax.experimental.pallas import tpu as pltpu


# ---------------------------------------------------------------------------
# Generation-aware configuration
# ---------------------------------------------------------------------------
def _tpu_generation():
    try:
        kind = jax.devices()[0].device_kind.lower()
    except Exception:
        return 6
    if "v7" in kind or "7x" in kind:
        return 7
    if "v6" in kind:
        return 6
    if "v5" in kind:
        return 5
    return 6


def _gen_config(gen):
    if gen >= 7:
        # v7x: 64 MiB physical VMEM (half of v5e/v6e), 2 TensorCores/chip.
        return dict(tm=512, tn=256, th=512, vmem=48 * 1024 * 1024)
    if gen == 5:
        # v5e: 128 MiB VMEM, 4x128^2 MXU, compute-bound earlier -> bigger th.
        return dict(tm=256, tn=128, th=1024, vmem=96 * 1024 * 1024)
    # v6e default: push tm toward the ~700-row MXU/HBM roofline crossover.
    return dict(tm=1024, tn=256, th=512, vmem=96 * 1024 * 1024)


def _round_up(x, m):
    return ((x + m - 1) // m) * m


def _choose_tiles(M, E, H, cfg, gen):
    # Output / lane dimension: pad E to a lane-dense multiple of 128.
    tn = min(cfg["tn"], _round_up(E, 128))
    Ep = _round_up(E, max(tn, 128))
    # Hidden (reduction) dimension.
    th = min(cfg["th"], _round_up(H, 128))
    Hp = _round_up(H, th)
    # Row tile: 16-aligned (bf16 sublane packing).
    tm = cfg["tm"]
    if M <= tm:
        tm = max(16, _round_up(M, 16))
    elif gen >= 7:
        # Keep at least 2 row tiles so both v7x TensorCores get work.
        tm = min(tm, max(256, _round_up((M + 1) // 2, 16)))
    Mp = _round_up(M, tm)
    return tm, tn, th, Mp, Ep, Hp


def _resident_fits(tm, Ep, Hp, vmem_budget):
    """Conservative VMEM estimate for the weight-resident path
    (double-buffered inputs/outputs + in-body hidden temporaries)."""
    weights = 2 * (Ep * Hp + Hp * Ep) * 2          # bf16 W1 + W2, 2 buffers
    xio = 2 * tm * Ep * 4 + 2 * tm * Ep * 4        # x block + out block
    bias = 2 * (Hp + Ep) * 4
    hidden = tm * Hp * (4 + 2)                     # f32 hidden + bf16 copy
    return weights + xio + bias + hidden <= int(0.7 * vmem_budget)


# ---------------------------------------------------------------------------
# Kernels
# ---------------------------------------------------------------------------
def _ffn_streamed_kernel(x_ref, w1_ref, b1_ref, w2_ref, b2_ref, o_ref, *, th):
    """grid = (row tiles, out-E tiles, hidden tiles [reduction, last]).
    o_ref (f32, block invariant over the h axis) doubles as the accumulator."""
    h = pl.program_id(2)

    @pl.when(h == 0)
    def _init():
        # Initialize the accumulator with the second bias (added exactly once).
        o_ref[...] = jnp.broadcast_to(b2_ref[...], o_ref.shape)

    # First matmul: per-tile bf16 cast of x, f32 accumulation on the MXU.
    hid = jnp.dot(x_ref[...].astype(jnp.bfloat16), w1_ref[...],
                  preferred_element_type=jnp.float32)
    # b1 is resident (1, Hp); slice the current hidden tile (lane-aligned).
    h0 = pl.multiple_of(h * th, 128)
    hid = jnp.maximum(hid + b1_ref[:, pl.ds(h0, th)], 0.0)

    # Second matmul: accumulate straight into the f32 output block.
    o_ref[...] += jnp.dot(hid.astype(jnp.bfloat16), w2_ref[...],
                          preferred_element_type=jnp.float32)


def _ffn_resident_kernel(x_ref, w1_ref, b1_ref, w2_ref, b2_ref, o_ref):
    """grid = (row tiles,); W1/W2/b1/b2 are grid-invariant resident blocks,
    so weights are DMA'd from HBM exactly once for the whole call."""
    hid = jnp.dot(x_ref[...].astype(jnp.bfloat16), w1_ref[...],
                  preferred_element_type=jnp.float32)
    hid = jnp.maximum(hid + b1_ref[...], 0.0)
    o_ref[...] = (jnp.dot(hid.astype(jnp.bfloat16), w2_ref[...],
                          preferred_element_type=jnp.float32)
                  + b2_ref[...])


# ---------------------------------------------------------------------------
# Wrapper: fused Linear -> ReLU -> Linear for one expert
# ---------------------------------------------------------------------------
def expert_ffn(x2d, w1, b1, w2, b2):
    """x2d: (M, E) f32; w1: (E, H) bf16; b1: (1, H) f32;
    w2: (H, E) bf16; b2: (1, E) f32  ->  (M, E) f32, H = 4E."""
    M, E = x2d.shape
    H = w1.shape[1]

    gen = _tpu_generation()
    cfg = _gen_config(gen)
    tm, tn, th, Mp, Ep, Hp = _choose_tiles(M, E, H, cfg, gen)

    # Defensive (compile-time) dtype normalization; no-op when params are
    # already stored in bf16 as intended.
    if w1.dtype != jnp.bfloat16:
        w1 = w1.astype(jnp.bfloat16)
    if w2.dtype != jnp.bfloat16:
        w2 = w2.astype(jnp.bfloat16)
    b1 = b1.astype(jnp.float32)
    b2 = b2.astype(jnp.float32)

    # Zero-pad to the chosen tiles (all pads are no-ops for aligned shapes).
    x_p = jnp.pad(x2d, ((0, Mp - M), (0, Ep - E)))
    w1_p = jnp.pad(w1, ((0, Ep - E), (0, Hp - H)))
    b1_p = jnp.pad(b1, ((0, 0), (0, Hp - H)))
    w2_p = jnp.pad(w2, ((0, Hp - H), (0, Ep - E)))
    b2_p = jnp.pad(b2, ((0, 0), (0, Ep - E)))

    cost = pl.CostEstimate(
        flops=4 * Mp * Ep * Hp,
        transcendentals=0,
        bytes_accessed=(Mp * Ep * 4            # x
                        + 2 * Ep * Hp * 2      # W1 + W2 (bf16)
                        + (Hp + Ep) * 4        # biases
                        + Mp * Ep * 4))        # out

    if _resident_fits(tm, Ep, Hp, cfg["vmem"]):
        # Weight-resident path: weights live in VMEM for the whole call.
        out_p = pl.pallas_call(
            _ffn_resident_kernel,
            out_shape=jax.ShapeDtypeStruct((Mp, Ep), jnp.float32),
            grid_spec=pltpu.PrefetchScalarGridSpec(
                num_scalar_prefetch=0,
                grid=(Mp // tm,),
                in_specs=[
                    pl.BlockSpec((tm, Ep), lambda i: (i, 0)),   # x rows
                    pl.BlockSpec((Ep, Hp), lambda i: (0, 0)),   # W1 resident
                    pl.BlockSpec((1, Hp), lambda i: (0, 0)),    # b1 resident
                    pl.BlockSpec((Hp, Ep), lambda i: (0, 0)),   # W2 resident
                    pl.BlockSpec((1, Ep), lambda i: (0, 0)),    # b2 resident
                ],
                out_specs=pl.BlockSpec((tm, Ep), lambda i: (i, 0)),
            ),
            compiler_params=pltpu.CompilerParams(
                dimension_semantics=("parallel",),
                vmem_limit_bytes=cfg["vmem"],
            ),
            cost_estimate=cost,
        )(x_p, w1_p, b1_p, w2_p, b2_p)
    else:
        # Streamed path: tile rows, output-E and the hidden reduction.
        kernel = functools.partial(_ffn_streamed_kernel, th=th)
        out_p = pl.pallas_call(
            kernel,
            out_shape=jax.ShapeDtypeStruct((Mp, Ep), jnp.float32),
            grid_spec=pltpu.PrefetchScalarGridSpec(
                num_scalar_prefetch=0,
                grid=(Mp // tm, Ep // tn, Hp // th),
                in_specs=[
                    pl.BlockSpec((tm, Ep), lambda i, j, h: (i, 0)),   # x rows
                    pl.BlockSpec((Ep, th), lambda i, j, h: (0, h)),   # W1 cols
                    pl.BlockSpec((1, Hp), lambda i, j, h: (0, 0)),    # b1 resident
                    pl.BlockSpec((th, tn), lambda i, j, h: (h, j)),   # W2 tile
                    pl.BlockSpec((1, tn), lambda i, j, h: (0, j)),    # b2 slice
                ],
                out_specs=pl.BlockSpec((tm, tn), lambda i, j, h: (i, j)),
            ),
            compiler_params=pltpu.CompilerParams(
                dimension_semantics=("parallel", "parallel", "arbitrary"),
                vmem_limit_bytes=cfg["vmem"],
            ),
            cost_estimate=cost,
        )(x_p, w1_p, b1_p, w2_p, b2_p)

    return out_p[:M, :E]


# ---------------------------------------------------------------------------
# DeMIXLayer wrapper
# ---------------------------------------------------------------------------
def demix_layer_forward(x, params, expert_id):
    """x: (..., E) -> (..., E), running only the selected expert."""
    num_experts = len(params["experts"])
    assert 0 <= expert_id < num_experts, "Invalid expert id"
    # TODO(synk): requires_grad freezing of non-selected experts is an
    # autograd-only concern with no forward-pass equivalent.
    ex = params["experts"][expert_id]

    orig_shape = x.shape
    E = orig_shape[-1]
    x2d = x.reshape(-1, E)
    out = expert_ffn(x2d, ex["w1"], ex["b1"], ex["w2"], ex["b2"])
    return out.reshape(orig_shape)


# ---------------------------------------------------------------------------
# Parameter init (deterministic, mirrors nn.Linear's uniform init scale).
# Weights are stored (in, out) and in bf16 so the kernel streams them from
# HBM at 2 B/elem with no per-call cast.
# ---------------------------------------------------------------------------
def init_demix_params(key, num_experts, embed_size):
    hidden = 4 * embed_size
    bound1 = 1.0 / math.sqrt(embed_size)
    bound2 = 1.0 / math.sqrt(hidden)
    keys = jax.random.split(key, 4 * num_experts)
    experts = []
    for e in range(num_experts):
        k1, k2, k3, k4 = keys[4 * e:4 * e + 4]
        experts.append({
            "w1": jax.random.uniform(k1, (embed_size, hidden), jnp.float32,
                                     -bound1, bound1).astype(jnp.bfloat16),
            "b1": jax.random.uniform(k2, (1, hidden), jnp.float32,
                                     -bound1, bound1),
            "w2": jax.random.uniform(k3, (hidden, embed_size), jnp.float32,
                                     -bound2, bound2).astype(jnp.bfloat16),
            "b2": jax.random.uniform(k4, (1, embed_size), jnp.float32,
                                     -bound2, bound2),
        })
    return {"experts": experts}


# Pure-JAX reference with the SAME precision contract (bf16 MXU operands,
# f32 accumulation) used to validate the kernel output.
def _reference_forward(x2d, params, expert_id):
    ex = params["experts"][expert_id]
    h = jnp.dot(x2d.astype(jnp.bfloat16), ex["w1"],
                preferred_element_type=jnp.float32) + ex["b1"]
    h = jnp.maximum(h, 0.0)
    return jnp.dot(h.astype(jnp.bfloat16), ex["w2"],
                   preferred_element_type=jnp.float32) + ex["b2"]


# ---------------------------------------------------------------------------
if __name__ == "__main__":
    embed_size = 32
    num_experts = 3
    expert_id = 1
    batch, seq = 2, 8

    key = jax.random.PRNGKey(0)
    pkey, xkey = jax.random.split(key)
    params = init_demix_params(pkey, num_experts, embed_size)
    x = jax.random.normal(xkey, (batch, seq, embed_size), dtype=jnp.float32)

    out = demix_layer_forward(x, params, expert_id)
    out = jax.block_until_ready(out)

    assert out.shape == (batch, seq, embed_size)
    assert bool(jnp.all(jnp.isfinite(out)))

    ref = _reference_forward(x.reshape(-1, embed_size), params, expert_id)
    ref = ref.reshape(batch, seq, embed_size)
    max_diff = float(jnp.max(jnp.abs(out - ref)))
    assert bool(jnp.allclose(out, ref, rtol=1e-3, atol=1e-3)), (
        "max abs diff = %f" % max_diff)

    print("KERNEL_OK")
</pallas_src>

<mosaic_0001>
module attributes {stable_mosaic.version = 11 : i64} {
  func.func @_ffn_resident_kernel(%arg0: i32, %arg1: memref<16x128xf32, #tpu.memory_space<vmem>>, %arg2: memref<128x128xbf16, #tpu.memory_space<vmem>>, %arg3: memref<1x128xf32, #tpu.memory_space<vmem>>, %arg4: memref<128x128xbf16, #tpu.memory_space<vmem>>, %arg5: memref<1x128xf32, #tpu.memory_space<vmem>>, %arg6: memref<16x128xf32, #tpu.memory_space<vmem>>) attributes {dimension_semantics = [#tpu.dimension_semantics<parallel>], iteration_bounds = array<i64: 1>, scalar_prefetch = 0 : i64, scratch_operands = 0 : i64, tpu.core_type = #tpu.core_type<tc>, window_params = [{transform_indices = @transform_0, window_bounds = array<i64: 16, 128>}, {pipeline_mode = #tpu.pipeline_mode<synchronous>, transform_indices = @transform_1, window_bounds = array<i64: 128, 128>}, {pipeline_mode = #tpu.pipeline_mode<synchronous>, transform_indices = @transform_2, window_bounds = array<i64: 1, 128>}, {pipeline_mode = #tpu.pipeline_mode<synchronous>, transform_indices = @transform_3, window_bounds = array<i64: 128, 128>}, {pipeline_mode = #tpu.pipeline_mode<synchronous>, transform_indices = @transform_4, window_bounds = array<i64: 1, 128>}, {transform_indices = @transform_5, window_bounds = array<i64: 16, 128>}]} {
    %c0 = arith.constant 0 : index
    %c0_0 = arith.constant 0 : index
    %0 = vector.load %arg1[%c0, %c0_0] : memref<16x128xf32, #tpu.memory_space<vmem>>, vector<16x128xf32>
    %1 = arith.truncf %0 : vector<16x128xf32> to vector<16x128xbf16>
    %c0_1 = arith.constant 0 : index
    %c0_2 = arith.constant 0 : index
    %2 = vector.load %arg2[%c0_1, %c0_2] : memref<128x128xbf16, #tpu.memory_space<vmem>>, vector<128x128xbf16>
    %cst = arith.constant dense<0.000000e+00> : vector<16x128xf32>
    %3 = tpu.matmul %1, %2, %cst {dimension_numbers = #tpu.dot_dimension_numbers<[1], [0], [0], [1], [0, 0, 1, 1], [], []>} : vector<16x128xbf16>, vector<128x128xbf16>, vector<16x128xf32> -> vector<16x128xf32>
    %c0_3 = arith.constant 0 : index
    %c0_4 = arith.constant 0 : index
    %4 = vector.load %arg3[%c0_3, %c0_4] : memref<1x128xf32, #tpu.memory_space<vmem>>, vector<1x128xf32>
    %5 = vector.broadcast %4 : vector<1x128xf32> to vector<16x128xf32>
    %6 = arith.addf %3, %5 : vector<16x128xf32>
    %cst_5 = arith.constant 0.000000e+00 : f32
    %7 = vector.broadcast %cst_5 : f32 to vector<16x128xf32>
    %8 = arith.maximumf %6, %7 : vector<16x128xf32>
    %9 = arith.truncf %8 : vector<16x128xf32> to vector<16x128xbf16>
    %c0_6 = arith.constant 0 : index
    %c0_7 = arith.constant 0 : index
    %10 = vector.load %arg4[%c0_6, %c0_7] : memref<128x128xbf16, #tpu.memory_space<vmem>>, vector<128x128xbf16>
    %cst_8 = arith.constant dense<0.000000e+00> : vector<16x128xf32>
    %11 = tpu.matmul %9, %10, %cst_8 {dimension_numbers = #tpu.dot_dimension_numbers<[1], [0], [0], [1], [0, 0, 1, 1], [], []>} : vector<16x128xbf16>, vector<128x128xbf16>, vector<16x128xf32> -> vector<16x128xf32>
    %c0_9 = arith.constant 0 : index
    %c0_10 = arith.constant 0 : index
    %12 = vector.load %arg5[%c0_9, %c0_10] : memref<1x128xf32, #tpu.memory_space<vmem>>, vector<1x128xf32>
    %13 = vector.broadcast %12 : vector<1x128xf32> to vector<16x128xf32>
    %14 = arith.addf %11, %13 : vector<16x128xf32>
    %c0_11 = arith.constant 0 : index
    %c0_12 = arith.constant 0 : index
    %15 = vector.load %arg6[%c0_11, %c0_12] : memref<16x128xf32, #tpu.memory_space<vmem>>, vector<16x128xf32>
    tpu.vector_store %arg6[%c0_11, %c0_12], %14 {strides = array<i32>} : memref<16x128xf32, #tpu.memory_space<vmem>>, vector<16x128xf32>,
    return
  }
  func.func @transform_0(%arg0: i32) -> (i32, i32) {
    %c0_i32 = arith.constant 0 : i32
    %c0_i32_0 = arith.constant 0 : i32
    return %arg0, %c0_i32 : i32, i32
  }
  func.func @transform_1(%arg0: i32) -> (i32, i32) {
    %c0_i32 = arith.constant 0 : i32
    %c0_i32_0 = arith.constant 0 : i32
    %c0_i32_1 = arith.constant 0 : i32
    return %c0_i32, %c0_i32_0 : i32, i32
  }
  func.func @transform_2(%arg0: i32) -> (i32, i32) {
    %c0_i32 = arith.constant 0 : i32
    %c0_i32_0 = arith.constant 0 : i32
    %c0_i32_1 = arith.constant 0 : i32
    return %c0_i32, %c0_i32_0 : i32, i32
  }
  func.func @transform_3(%arg0: i32) -> (i32, i32) {
    %c0_i32 = arith.constant 0 : i32
    %c0_i32_0 = arith.constant 0 : i32
    %c0_i32_1 = arith.constant 0 : i32
    return %c0_i32, %c0_i32_0 : i32, i32
  }
  func.func @transform_4(%arg0: i32) -> (i32, i32) {
    %c0_i32 = arith.constant 0 : i32
    %c0_i32_0 = arith.constant 0 : i32
    %c0_i32_1 = arith.constant 0 : i32
    return %c0_i32, %c0_i32_0 : i32, i32
  }
  func.func @transform_5(%arg0: i32) -> (i32, i32) {
    %c0_i32 = arith.constant 0 : i32
    %c0_i32_0 = arith.constant 0 : i32
    return %arg0, %c0_i32 : i32, i32
  }
}

</mosaic_0001>

<bundles_post_ra>
// kernel: tpu_custom_call.1
= control target key start
LH: loop header
LB: loop body
LE: loop exit
PB: predicated region body
PF: predicated region fallthrough
CT: control target
= control target key end

     0   :  { %10 = vsyncpa [#allocation3], 0  ;;  %s565_s0 = inlined_call_operand.hbm [shape: f32[16,128], index: 0, kind: input, shape index: {}]   ;;  %s566_s1 = inlined_call_operand.hbm [shape: bf16[128,128], index: 1, kind: input, shape index: {}]   ;;  %s567_s2 = inlined_call_operand.vmem [shape: f32[1,128], index: 2, kind: input, shape index: {}]   ;;  %s568_s3 = inlined_call_operand.hbm [shape: bf16[128,128], index: 3, kind: input, shape index: {}]   ;;  %s569_s4 = inlined_call_operand.vmem [shape: f32[1,128], index: 4, kind: input, shape index: {}]   ;;  %s570_s5 = inlined_call_operand.hbm [shape: f32[16,128], index: 5, kind: output, shape index: {}]  }
   0x1   :  { %11 = vsyncpa [#allocation6], 0 }
   0x2   :  { %12 = vsyncpa [#allocation4], 0  ;;  %s501_s18 = smov [#allocation5]  }
   0x3   :  { %s30_s19 = sshll.u32 %s501_s18, 4  ;;  %s31_s19 = int_to_ptr.vmem [resolvable:$true] %s30_s19 }
   0x4   :  { %s423_s20 = scalar_lea.vmem %s31_s19, 1024  ;;  %p428_p1 = scmp.lt.s32.totalorder %s31_s19, %s31_s19 }
   0x5   :  { %p424_p0 = scmp.ne.s32.totalorder %s31_s19, %s423_s20  ;;  %p429_p2 = scmp.lt.s32.totalorder %s423_s20, %s423_s20 }
   0x7   :  { %p430_p3 = por %p429_p2, %p428_p1 }
   0x9   :  { %p431_p4 = pnand %p430_p3, %p424_p0 }
   0xb   :  { %434 = shalt.err (!%p431_p4)
}
   0xc   :  { %s502_s21 = smov 64   ;;  %s503_s22 = smov 4  }
   0xd   :  { %36 = dma.hbm_to_vmem [thread:$0]  %s566_s1, 1024, %s31_s19, [#allocation6], %s502_s21, %s502_s21, %s503_s22  }
   0xe   :  { %s504_s25 = smov [#allocation2]  }
   0xf   :  { %s18_s26 = sshll.u32 %s504_s25, 4  ;;  %s19_s26 = int_to_ptr.vmem [resolvable:$true] %s18_s26 }
  0x10   :  { %s443_s27 = scalar_lea.vmem %s19_s26, 256  ;;  %p448_p6 = scmp.lt.s32.totalorder %s19_s26, %s19_s26 }
  0x11   :  { %p444_p5 = scmp.ne.s32.totalorder %s19_s26, %s443_s27  ;;  %p449_p7 = scmp.lt.s32.totalorder %s443_s27, %s443_s27 }
  0x13   :  { %p450_p8 = por %p449_p7, %p448_p6 }
  0x15   :  { %p451_p9 = pnand %p450_p8, %p444_p5 }
  0x17   :  { %454 = shalt.err (!%p451_p9)
}
  0x18   :  { %s505_s28 = smov 128   ;;  %s506_s29 = smov 8  }
  0x19   :  { %24 = dma.hbm_to_vmem [thread:$0]  %s565_s0, 256, %s19_s26, [#allocation3], %s505_s28, %s505_s28, %s506_s29  }
  0x1a   :  { %s507_s1 = smov [#allocation7]  }
  0x1b   :  { %s44_s7 = sshll.u32 %s507_s1, 4  ;;  %s45_s7 = int_to_ptr.vmem [resolvable:$true] %s44_s7 }
  0x1c   :  { %s463_s8 = scalar_lea.vmem %s45_s7, 1024  ;;  %p468_p11 = scmp.lt.s32.totalorder %s45_s7, %s45_s7 }
  0x1d   :  { %p464_p10 = scmp.ne.s32.totalorder %s45_s7, %s463_s8  ;;  %p469_p12 = scmp.lt.s32.totalorder %s463_s8, %s463_s8 }
  0x1f   :  { %p470_p13 = por %p469_p12, %p468_p11 }
  0x21   :  { %p471_p0 = pnand %p470_p13, %p464_p10 }
  0x23   :  { %474 = shalt.err (!%p471_p0)
}
  0x24   :  { %50 = dma.hbm_to_vmem [thread:$0]  %s568_s3, 1024, %s45_s7, [#allocation6], %s502_s21, %s502_s21, %s503_s22  }
  0x25   :  { %495 = dma.done.wait [#allocation3], 256  }
  0x26   :  { %496 = vsyncadd [#allocation3], 4294967040 }
  0x27   :  { %497 = dma.done.wait [#allocation6], 2048  }
  0x28   :  { %498 = vsyncadd [#allocation6], 4294965248  ;;  %v508_v0 = vmov 0.0   ;;  %vm509_vm0 = vmmov 0   ;;  %v399_v1 = vld [vmem:[#allocation5 + $0x38] sm:$0xff]   ;;  %v400_v2 = vld [vmem:[#allocation5 + $0x30] sm:$0xff]  }
  0x29   :  { %349 = vmatprep.subr.bf16.mxu0 %v508_v0  ;;  %365 = vmatprep.mubr.msk.bf16.mxu0 %vm509_vm0, %v508_v0  ;;  %v401_v3 = vld [vmem:[#allocation5 + $0x28] sm:$0xff]   ;;  %v407_v4 = vld [vmem:[#allocation7 + $0x38] sm:$0xff]   ;;  %v402_v5 = vld [vmem:[#allocation5 + $0x20] sm:$0xff]   ;;  %s510_s13 = smov [#allocation8]  }
  0x2a   :  { %369 = vmatprep.subr.bf16.mxu1 %v508_v0  ;;  %385 = vmatprep.mubr.msk.bf16.mxu1 %vm509_vm0, %v508_v0  ;;  %v408_v6 = vld [vmem:[#allocation7 + $0x30] sm:$0xff]   ;;  %v403_v7 = vld [vmem:[#allocation5 + $0x18] sm:$0xff]   ;;  %v409_v8 = vld [vmem:[#allocation7 + $0x28] sm:$0xff]   ;;  %s300_s14 = sshll.u32 %s510_s13, 4  ;;  %s301_s14 = int_to_ptr.vmem [resolvable:$true] %s300_s14 }
  0x2b   :  { %350 = vmatpush3.bf16.msra.mxu0 %v399_v1  ;;  %370 = vmatpush3.bf16.msra.mxu1 %v407_v4  ;;  %v404_v9 = vld [vmem:[#allocation5 + $0x10] sm:$0xff]   ;;  %v410_v10 = vld [vmem:[#allocation7 + $0x20] sm:$0xff]   ;;  %v405_v11 = vld [vmem:[#allocation5 + $0x8] sm:$0xff]   ;;  %p480_p2 = scmp.lt.s32.totalorder %s301_s14, %s301_s14 }
  0x2c   :  { %351 = vmatprep.subr.bf16.mxu0 %v508_v0  ;;  %371 = vmatprep.subr.bf16.mxu1 %v508_v0  ;;  %v411_v12 = vld [vmem:[#allocation7 + $0x18] sm:$0xff]   ;;  %v406_v13 = vld [vmem:[#allocation5] sm:$0xff]   ;;  %v63_v14 = vld [vmem:[#allocation2] sm:$0xff] }
  0x2d   :  { %v64_v15 = vld [vmem:[#allocation2 + $0x8] sm:$0xff]  ;;  %v412_v17 = vld [vmem:[#allocation7 + $0x10] sm:$0xff]   ;;  %v413_v18 = vld [vmem:[#allocation7 + $0x8] sm:$0xff]  }
  0x2e   :  { %v65_v16 = vpack.c.bf16 %v64_v15, %v63_v14  ;;  %v414_v19 = vld [vmem:[#allocation7] sm:$0xff]   ;;  %v313_v20 = vld [vmem:[%s567_s2] ss:$0 sm:$0xff]  ;;  %s475_s2 = scalar_lea.vmem %s301_s14, 256 }
  0x2f   :  { %352 = vmatpush3.bf16.msra.mxu0 %v400_v2  ;;  %372 = vmatpush3.bf16.msra.mxu1 %v408_v6  ;;  %v322_v30 = vld [vmem:[%s569_s4] ss:$0 sm:$0xff]  ;;  %p476_p1 = scmp.ne.s32.totalorder %s301_s14, %s475_s2  ;;  %p481_p3 = scmp.lt.s32.totalorder %s475_s2, %s475_s2 }
  0x30   :  { %353 = vmatprep.subr.bf16.mxu0 %v508_v0  ;;  %373 = vmatprep.subr.bf16.mxu1 %v508_v0 }
  0x31   :  { %p482_p4 = por %p481_p3, %p480_p2 }
  0x33   :  { %354 = vmatpush3.bf16.msra.mxu0 %v401_v3  ;;  %374 = vmatpush3.bf16.msra.mxu1 %v409_v8  ;;  %p483_p5 = pnand %p482_p4, %p476_p1 }
  0x34   :  { %355 = vmatprep.subr.bf16.mxu0 %v508_v0  ;;  %375 = vmatprep.subr.bf16.mxu1 %v508_v0 }
  0x37   :  { %356 = vmatpush3.bf16.msra.mxu0 %v402_v5  ;;  %376 = vmatpush3.bf16.msra.mxu1 %v410_v10 }
  0x38   :  { %357 = vmatprep.subr.bf16.mxu0 %v508_v0  ;;  %377 = vmatprep.subr.bf16.mxu1 %v508_v0 }
  0x3b   :  { %358 = vmatpush3.bf16.msra.mxu0 %v403_v7  ;;  %378 = vmatpush3.bf16.msra.mxu1 %v411_v12 }
  0x3c   :  { %359 = vmatprep.subr.bf16.mxu0 %v508_v0  ;;  %379 = vmatprep.subr.bf16.mxu1 %v508_v0 }
  0x3f   :  { %360 = vmatpush3.bf16.msra.mxu0 %v404_v9  ;;  %380 = vmatpush3.bf16.msra.mxu1 %v412_v17 }
  0x40   :  { %361 = vmatprep.subr.bf16.mxu0 %v508_v0  ;;  %381 = vmatprep.subr.bf16.mxu1 %v508_v0 }
  0x43   :  { %362 = vmatpush3.bf16.msra.mxu0 %v405_v11  ;;  %382 = vmatpush3.bf16.msra.mxu1 %v413_v18 }
  0x44   :  { %363 = vmatprep.subr.bf16.mxu0 %v508_v0  ;;  %383 = vmatprep.subr.bf16.mxu1 %v508_v0 }
  0x47   :  { %364 = vmatpush3.bf16.msra.mxu0 %v406_v13  ;;  %384 = vmatpush3.bf16.msra.mxu1 %v414_v19 }
  0x4a   :  { %366 = vmatmul.mubr.bf16.vlgmr.msra.gmra.mxu0 %v65_v16 }
 0x10a   :  { %v171_v21 = vpop.f32.mrf.mxu0 }
 0x10b   :  { %v172_v23 = vadd.f32 %v313_v20, %v171_v21 }
 0x10c   :  { %v367_v22 = vpop.f32.mrf.mxu0 }
 0x10d   :  { %v178_v27 = vmax.f32 %v172_v23, 0.0 }
 0x10e   :  { %v174_v24 = vpop.f32.mrf.mxu0 }
 0x10f   :  { %v175_v25 = vadd.f32 %v313_v20, %v174_v24 }
 0x110   :  { %v368_v26 = vpop.f32.mrf.mxu0 }
 0x111   :  { %v179_v28 = vmax.f32 %v175_v25, 0.0 }
 0x113   :  { %v180_v29 = vpack.c.bf16 %v179_v28, %v178_v27 }
 0x115   :  { %386 = vmatmul.mubr.bf16.vlgmr.msra.gmra.mxu1 %v180_v29 }
 0x1d5   :  { %v286_v31 = vpop.f32.mrf.mxu1 }
 0x1d6   :  { %v287_v32 = vadd.f32 %v322_v30, %v286_v31 }
 0x1d7   :  { %v387_v33 = vpop.f32.mrf.mxu1 }
 0x1d8   :  { %293 = vst [vmem:[#allocation8] sm:$0xff] %v287_v32 }
 0x1d9   :  { %v289_v34 = vpop.f32.mrf.mxu1 }
 0x1da   :  { %v290_v35 = vadd.f32 %v322_v30, %v289_v34 }
 0x1db   :  { %v388_v36 = vpop.f32.mrf.mxu1 }
 0x1dc   :  { %294 = vst [vmem:[#allocation8 + $0x8] sm:$0xff] %v290_v35 }
 0x1dd   :  { %486 = shalt.err (!%p483_p5)
}
 0x1de   :  { %306 = dma.vmem_to_hbm [thread:$0]  %s301_s14, 256, %s570_s5, [#allocation4], %s505_s28, %s505_s28, %s506_s29  }
 0x1df   :  { %499 = dma.done.wait [#allocation4], 256  }
 0x1e0   :  { %500 = vsyncadd [#allocation4], 4294967040 }
 0x1e1   :  { %310 = vsyncpa [#allocation3], 1 }
 0x1e2   :  { %311 = vsyncpa [#allocation6], 1 }
 0x1e3   :  { %312 = vsyncpa [#allocation4], 1 }

</bundles_post_ra>
